<compile_context>
chip_gen: v7x
topology: tpu7x:2x2x1
jax: 0.10.0
libtpu: 0.0.40
codegen_flags: <defaults>
</compile_context>

<pallas_src>
import functools

import jax
import jax.numpy as jnp
from jax import lax
from jax.experimental import pallas as pl
from jax.experimental.pallas import tpu as pltpu

_EPS = 1e-8


def _layer1_kernel(k_ref, simxk_ref, simkk_ref, stats_ref, noise_ref,
                   o1_ref, score_ref):
    """Per-'a'-tile Layer1 math + per-row L2 scores.

    k_ref     : (M, H)     full memory bank (resident)
    simxk_ref : (1, M)     cos(x, K[j])         (precomputed, resident)
    simkk_ref : (TA, M)    cos(K[a], K[j]) tile (precomputed, streamed)
    stats_ref : (4, M)     rows = [K[j]·w, ||K[j]||^2, sum_h K[j], sum_h w]
    noise_ref : (TA, M, H) gaussian noise tile (any float dtype)
    o1_ref    : (TA, M, H) O_1[a, j]            (any float dtype)
    score_ref : (TA, M)    ||O_1[a, j]||_2      (f32)
    """
    K = k_ref[...]                                           # (M, H)
    sim_xk = simxk_ref[...]                                  # (1, M)
    sim_ak = simkk_ref[...]                                  # (TA, M)
    stats = stats_ref[...]                                   # (4, M)
    noise = noise_ref[...].astype(jnp.float32)               # (TA, M, H)
    H = K.shape[-1]

    kw = stats[0:1, :]        # K[j] . w_vec
    kn2 = stats[1:2, :]       # ||K[j]||^2
    ksum = stats[2:3, :]      # sum_h K[j, h]
    wsum = stats[3:4, :]      # sum_h w_vec[h]   (same value in every column)

    # K'[a,j,:] = K[j,:] + s[a,j]
    s = sim_ak + sim_xk                                      # (TA, M)

    # importance weight, collapsed algebraically (no kp_hat materialization,
    # no (TA*M, H) x (H, 1) matmul); rsqrt goes to the otherwise-idle EUP.
    kp_sq = kn2 + (2.0 * ksum) * s + float(H) * (s * s)      # ||kp||^2, (TA, M)
    inv_kp = lax.rsqrt(jnp.maximum(kp_sq, _EPS * _EPS))      # 1 / max(||kp||, eps)
    means = (kw + wsum * s) * inv_kp                         # kp_hat . w_vec

    # O_1 = K' + means + 0.1 * noise   (the '+ 0.1 * O_prev(=0)' residual is dead)
    add = (s + means)[:, :, None]                            # (TA, M, 1)
    O1 = K[None, :, :] + add + 0.1 * noise                   # (TA, M, H), f32
    o1_ref[...] = O1.astype(o1_ref.dtype)
    score_ref[...] = jnp.sqrt(jnp.sum(O1 * O1, axis=-1))     # (TA, M)


def _vmem_capacity_bytes():
    """Physical VMEM per core; conservative (v7x-sized) fallback if unknown."""
    try:
        cap = int(getattr(pltpu.get_tpu_info(), "vmem_capacity_bytes", 0))
        if cap > 0:
            return cap
    except Exception:
        pass
    return 64 << 20


def _pick_ta(M, H, noise_itemsize=4, o1_itemsize=4):
    """Largest legal 'a'-tile (divides M; == M or a multiple of 8) whose live
    (TA, M, H) slabs (noise x2 double-buffered, O1 x2, ~2 f32 temps) fit in
    ~40% of physical VMEM.  Prefers >= 2 grid steps so both v7x TensorCores
    get work under dimension_semantics=("parallel",)."""
    budget = max(8 << 20, int(0.4 * _vmem_capacity_bytes()))
    per_a_row = M * H * (2 * noise_itemsize + 2 * o1_itemsize + 2 * 4)
    cap = max(1, budget // max(per_a_row, 1))
    legal = sorted({M} | {t for t in range(8, M, 8) if M % t == 0})
    fit = [t for t in legal if t <= cap]
    multi = [t for t in fit if 2 * t <= M]
    if multi:
        return max(multi)
    if fit:
        return max(fit)
    return legal[0]


@functools.partial(jax.jit, static_argnames=("ta", "o1_dtype"))
def _hecf_impl(x, K, noise, noise_fb, *, ta, o1_dtype):
    B, H = x.shape
    M = K.shape[0]
    grid = (M // ta,)
    hi = lax.Precision.HIGHEST

    # --- tiny plain-JAX prologue (hoisted out of the grid loop) ------------
    x_hat = x * lax.rsqrt(jnp.maximum(jnp.sum(x * x, -1, keepdims=True), _EPS * _EPS))
    K_hat = K * lax.rsqrt(jnp.maximum(jnp.sum(K * K, -1, keepdims=True), _EPS * _EPS))
    # gating similarity feeds the hard cos>0.3 threshold -> full precision
    sim_xk = jnp.dot(x_hat, K_hat.T, precision=hi,
                     preferred_element_type=jnp.float32)                # (1, M)
    active_row = (sim_xk > 0.3).astype(jnp.float32)                     # (1, M)
    n_active = jnp.sum(active_row)
    v = jnp.dot(active_row, K_hat, precision=hi) / jnp.maximum(n_active, 1.0)
    w_vec = x_hat + v                                                   # (1, H)
    sim_kk = jnp.dot(K_hat, K_hat.T, precision=hi,
                     preferred_element_type=jnp.float32)                # (M, M)
    stats = jnp.stack([
        jnp.dot(K, w_vec[0], precision=hi),     # K[j] . w_vec
        jnp.sum(K * K, axis=-1),                # ||K[j]||^2
        jnp.sum(K, axis=-1),                    # sum_h K[j]
        jnp.full((M,), jnp.sum(w_vec)),         # sum_h w_vec (broadcast)
    ], axis=0).astype(jnp.float32)                                      # (4, M)

    # --- big, tiled, pipelined kernel: O_1 + per-row scores ----------------
    noise_b = noise.dtype.itemsize
    o1_b = jnp.dtype(o1_dtype).itemsize
    need = (ta * M * H * (2 * noise_b + 2 * o1_b + 2 * 4)   # tiles + f32 temps
            + M * H * 4 + 6 * M * 4 + (2 << 20))            # residents + slack
    vmem_limit = int(min(max(need, 16 << 20), int(0.7 * _vmem_capacity_bytes())))

    O1, scores = pl.pallas_call(
        _layer1_kernel,
        out_shape=(jax.ShapeDtypeStruct((M, M, H), o1_dtype),   # O_1
                   jax.ShapeDtypeStruct((M, M), jnp.float32)),  # scores
        grid=grid,
        in_specs=[
            pl.BlockSpec((M, H), lambda a: (0, 0)),          # K (resident)
            pl.BlockSpec((1, M), lambda a: (0, 0)),          # sim_xk (resident)
            pl.BlockSpec((ta, M), lambda a: (a, 0)),         # sim_kk tile
            pl.BlockSpec((4, M), lambda a: (0, 0)),          # per-j stats
            pl.BlockSpec((ta, M, H), lambda a: (a, 0, 0)),   # noise tile (pipelined)
            # NOTE: only bump the noise spec to pipeline_mode=pl.Buffered(3) if an
            # xprof trace on v6e shows exposed DMA waits (costs one extra slab).
        ],
        out_specs=(
            pl.BlockSpec((ta, M, H), lambda a: (a, 0, 0)),
            pl.BlockSpec((ta, M), lambda a: (a, 0)),
        ),
        compiler_params=pltpu.CompilerParams(
            dimension_semantics=("parallel",),   # no cross-tile state
            vmem_limit_bytes=vmem_limit),
    )(K, sim_xk, sim_kk, stats, noise)

    # --- Layer2 thresholding (O(M^2)) stays in plain JAX -------------------
    active_col = active_row.T                                           # (M, 1)
    n_valid = jnp.maximum(n_active * M, 1.0)
    mean_s = jnp.sum(scores * active_col) / n_valid
    std_s = jnp.sqrt(jnp.sum(active_col * (scores - mean_s) ** 2) / n_valid)
    peak = (scores > mean_s + std_s).astype(jnp.float32) * active_col
    valley = (scores < mean_s - std_s).astype(jnp.float32) * active_col
    # Layer1 fallback branch (no active memory): W = 0 -> O_1 = 0.1 * noise.
    o1_fb = 0.1 * noise_fb
    # TODO(synk): random choice of k=2 valleys and the downstream LLM layers
    # (concept/scenario generation, zero-shot ranking, selection) are string
    # ops with no tensor/Pallas equivalent.
    return O1, scores, active_row, peak, valley, o1_fb


def hecf_forward(x, K, noise, noise_fb, *, ta=None, o1_dtype=jnp.float32):
    """ta: 'a'-axis tile (auto if None).  o1_dtype: O_1 storage dtype — pass
    jnp.bfloat16 (and bf16 noise) on HBM-bound v5e to ~halve traffic."""
    B, H = x.shape
    M = K.shape[0]
    assert B == 1, "tokenizer batch is 1 in the reference module"
    if ta is None:
        ta = _pick_ta(M, H, noise.dtype.itemsize, jnp.dtype(o1_dtype).itemsize)
    assert M % ta == 0 and (ta == M or ta % 8 == 0), (M, ta)
    return _hecf_impl(x, K, noise, noise_fb, ta=ta, o1_dtype=o1_dtype)


def hecf_reference(x, K, noise, noise_fb):
    """Pure-JAX, module-faithful reference of the same numeric path."""
    eps = 1e-8
    xn = jnp.maximum(jnp.linalg.norm(x, axis=-1, keepdims=True), eps)
    kn = jnp.maximum(jnp.linalg.norm(K, axis=-1, keepdims=True), eps)
    x_hat, K_hat = x / xn, K / kn
    sim_kx = K_hat @ x_hat.T
    sim_xk = x_hat @ K_hat.T
    sim_kk = K_hat @ K_hat.T
    active_col = (sim_kx > 0.3).astype(jnp.float32)
    active_row = (sim_xk > 0.3).astype(jnp.float32)
    n_active = jnp.maximum(jnp.sum(active_row), 1.0)
    kp = K[None] + sim_kk[:, :, None] + sim_xk[0:1, :, None]
    kp_hat = kp / jnp.maximum(jnp.linalg.norm(kp, axis=-1, keepdims=True), eps)
    mean_sim_x = jnp.sum(kp_hat * x_hat[None], axis=-1)
    cos_kp_k = jnp.einsum('ajh,mh->ajm', kp_hat, K_hat)
    mean_sim_mem = jnp.sum(cos_kp_k * active_row[None], axis=-1) / n_active
    W = kp + mean_sim_x[..., None] + mean_sim_mem[..., None]
    O1 = W + 0.1 * noise
    scores = jnp.linalg.norm(O1, axis=-1)
    M = K.shape[0]
    n_valid = jnp.maximum(jnp.sum(active_row) * M, 1.0)
    mean_s = jnp.sum(scores * active_col) / n_valid
    std_s = jnp.sqrt(jnp.sum(active_col * (scores - mean_s) ** 2) / n_valid)
    peak = (scores > mean_s + std_s).astype(jnp.float32) * active_col
    valley = (scores < mean_s - std_s).astype(jnp.float32) * active_col
    return O1, scores, active_row, peak, valley, 0.1 * noise_fb


if __name__ == "__main__":
    B, H, M = 1, 128, 16
    key = jax.random.PRNGKey(0)
    k1, k2, k3, k4 = jax.random.split(key, 4)

    x = jax.random.normal(k1, (B, H), jnp.float32)
    base = jax.random.normal(k2, (M, H), jnp.float32)
    # every other memory is correlated with x so the cos>0.3 gate fires for some
    corr = (jnp.arange(M) % 2 == 0).astype(jnp.float32)[:, None]
    K = corr * (x + 0.3 * base) + (1.0 - corr) * base
    noise = jax.random.normal(k3, (M, M, H), jnp.float32)
    noise_fb = jax.random.normal(k4, (B, H), jnp.float32)

    # auto tile picker prefers >= 2 grid steps -> ta=8, grid=(2,): exercises
    # the tiled / pipelined path
    outs = hecf_forward(x, K, noise, noise_fb)
    outs = jax.block_until_ready(outs)
    O1, scores, active, peak, valley, o1fb = outs

    # validate against the pure-JAX reference
    rO1, rscores, ractive, rpeak, rvalley, ro1fb = hecf_reference(x, K, noise, noise_fb)
    assert O1.shape == (M, M, H) and scores.shape == (M, M)
    assert peak.shape == (M, M) and valley.shape == (M, M)
    assert jnp.all(jnp.isfinite(O1)) and jnp.all(jnp.isfinite(scores))
    # f32 path with algebraically-equivalent normalization -> tight tolerances
    assert jnp.allclose(O1, rO1, rtol=5e-3, atol=5e-3)
    assert jnp.allclose(scores, rscores, rtol=5e-3, atol=5e-3)
    assert jnp.allclose(o1fb, ro1fb, rtol=1e-5, atol=1e-5)
    assert jnp.allclose(active, ractive)

    print("KERNEL_OK")
</pallas_src>

<mosaic_0001>
module attributes {stable_mosaic.version = 11 : i64} {
  func.func @_layer1_kernel(%arg0: i32, %arg1: memref<16x128xf32, #tpu.memory_space<vmem>>, %arg2: memref<1x16xf32, #tpu.memory_space<vmem>>, %arg3: memref<8x16xf32, #tpu.memory_space<vmem>>, %arg4: memref<4x16xf32, #tpu.memory_space<vmem>>, %arg5: memref<8x16x128xf32, #tpu.memory_space<vmem>>, %arg6: memref<8x16x128xf32, #tpu.memory_space<vmem>>, %arg7: memref<8x16xf32, #tpu.memory_space<vmem>>) attributes {dimension_semantics = [#tpu.dimension_semantics<parallel>], iteration_bounds = array<i64: 2>, scalar_prefetch = 0 : i64, scratch_operands = 0 : i64, tpu.core_type = #tpu.core_type<tc>, window_params = [{pipeline_mode = #tpu.pipeline_mode<synchronous>, transform_indices = @transform_0, window_bounds = array<i64: 16, 128>}, {pipeline_mode = #tpu.pipeline_mode<synchronous>, transform_indices = @transform_1, window_bounds = array<i64: 1, 16>}, {transform_indices = @transform_2, window_bounds = array<i64: 8, 16>}, {pipeline_mode = #tpu.pipeline_mode<synchronous>, transform_indices = @transform_3, window_bounds = array<i64: 4, 16>}, {transform_indices = @transform_4, window_bounds = array<i64: 8, 16, 128>}, {transform_indices = @transform_5, window_bounds = array<i64: 8, 16, 128>}, {transform_indices = @transform_6, window_bounds = array<i64: 8, 16>}]} {
    %c0 = arith.constant 0 : index
    %c0_0 = arith.constant 0 : index
    %0 = vector.load %arg1[%c0, %c0_0] : memref<16x128xf32, #tpu.memory_space<vmem>>, vector<16x128xf32>
    %c0_1 = arith.constant 0 : index
    %c0_2 = arith.constant 0 : index
    %1 = vector.load %arg2[%c0_1, %c0_2] : memref<1x16xf32, #tpu.memory_space<vmem>>, vector<1x16xf32>
    %c0_3 = arith.constant 0 : index
    %c0_4 = arith.constant 0 : index
    %2 = vector.load %arg3[%c0_3, %c0_4] : memref<8x16xf32, #tpu.memory_space<vmem>>, vector<8x16xf32>
    %c0_5 = arith.constant 0 : index
    %c0_6 = arith.constant 0 : index
    %3 = vector.load %arg4[%c0_5, %c0_6] : memref<4x16xf32, #tpu.memory_space<vmem>>, vector<4x16xf32>
    %c0_7 = arith.constant 0 : index
    %c0_8 = arith.constant 0 : index
    %c0_9 = arith.constant 0 : index
    %4 = vector.load %arg5[%c0_7, %c0_8, %c0_9] : memref<8x16x128xf32, #tpu.memory_space<vmem>>, vector<8x16x128xf32>
    %5 = vector.extract_strided_slice %3 {offsets = [0, 0], sizes = [1, 16], strides = [1, 1]} : vector<4x16xf32> to vector<1x16xf32>
    %6 = vector.extract_strided_slice %3 {offsets = [1, 0], sizes = [1, 16], strides = [1, 1]} : vector<4x16xf32> to vector<1x16xf32>
    %7 = vector.extract_strided_slice %3 {offsets = [2, 0], sizes = [1, 16], strides = [1, 1]} : vector<4x16xf32> to vector<1x16xf32>
    %8 = vector.extract_strided_slice %3 {offsets = [3, 0], sizes = [1, 16], strides = [1, 1]} : vector<4x16xf32> to vector<1x16xf32>
    %9 = vector.broadcast %1 : vector<1x16xf32> to vector<8x16xf32>
    %10 = arith.addf %2, %9 : vector<8x16xf32>
    %cst = arith.constant 2.000000e+00 : f32
    %11 = vector.broadcast %cst : f32 to vector<1x16xf32>
    %12 = arith.mulf %11, %7 : vector<1x16xf32>
    %13 = vector.broadcast %12 : vector<1x16xf32> to vector<8x16xf32>
    %14 = arith.mulf %13, %10 : vector<8x16xf32>
    %15 = vector.broadcast %6 : vector<1x16xf32> to vector<8x16xf32>
    %16 = arith.addf %15, %14 : vector<8x16xf32>
    %17 = arith.mulf %10, %10 : vector<8x16xf32>
    %cst_10 = arith.constant 1.280000e+02 : f32
    %18 = vector.broadcast %cst_10 : f32 to vector<8x16xf32>
    %19 = arith.mulf %18, %17 : vector<8x16xf32>
    %20 = arith.addf %16, %19 : vector<8x16xf32>
    %cst_11 = arith.constant 1.000000e-16 : f32
    %21 = vector.broadcast %cst_11 : f32 to vector<8x16xf32>
    %22 = arith.maximumf %20, %21 : vector<8x16xf32>
    %23 = math.rsqrt %22 : vector<8x16xf32>
    %24 = vector.broadcast %8 : vector<1x16xf32> to vector<8x16xf32>
    %25 = arith.mulf %24, %10 : vector<8x16xf32>
    %26 = vector.broadcast %5 : vector<1x16xf32> to vector<8x16xf32>
    %27 = arith.addf %26, %25 : vector<8x16xf32>
    %28 = arith.mulf %27, %23 : vector<8x16xf32>
    %29 = arith.addf %10, %28 : vector<8x16xf32>
    %30 = vector.shape_cast %29 : vector<8x16xf32> to vector<8x16x1xf32>
    %31 = vector.shape_cast %0 : vector<16x128xf32> to vector<1x16x128xf32>
    %32 = vector.broadcast %31 : vector<1x16x128xf32> to vector<8x16x128xf32>
    %33 = vector.broadcast %30 : vector<8x16x1xf32> to vector<8x16x128xf32>
    %34 = arith.addf %32, %33 : vector<8x16x128xf32>
    %cst_12 = arith.constant 1.000000e-01 : f32
    %35 = vector.broadcast %cst_12 : f32 to vector<8x16x128xf32>
    %36 = arith.mulf %35, %4 : vector<8x16x128xf32>
    %37 = arith.addf %34, %36 : vector<8x16x128xf32>
    %c0_13 = arith.constant 0 : index
    %c0_14 = arith.constant 0 : index
    %c0_15 = arith.constant 0 : index
    %38 = vector.load %arg6[%c0_13, %c0_14, %c0_15] : memref<8x16x128xf32, #tpu.memory_space<vmem>>, vector<8x16x128xf32>
    tpu.vector_store %arg6[%c0_13, %c0_14, %c0_15], %37 {strides = array<i32>} : memref<8x16x128xf32, #tpu.memory_space<vmem>>, vector<8x16x128xf32>,
    %39 = arith.mulf %37, %37 : vector<8x16x128xf32>
    %cst_16 = arith.constant dense<0.000000e+00> : vector<8x16xf32>
    %40 = vector.multi_reduction <add>, %39, %cst_16 [2] : vector<8x16x128xf32> to vector<8x16xf32>
    %41 = math.sqrt %40 : vector<8x16xf32>
    %c0_17 = arith.constant 0 : index
    %c0_18 = arith.constant 0 : index
    %42 = vector.load %arg7[%c0_17, %c0_18] : memref<8x16xf32, #tpu.memory_space<vmem>>, vector<8x16xf32>
    tpu.vector_store %arg7[%c0_17, %c0_18], %41 {strides = array<i32>} : memref<8x16xf32, #tpu.memory_space<vmem>>, vector<8x16xf32>,
    return
  }
  func.func @transform_0(%arg0: i32) -> (i32, i32) {
    %c0_i32 = arith.constant 0 : i32
    %c0_i32_0 = arith.constant 0 : i32
    %c0_i32_1 = arith.constant 0 : i32
    return %c0_i32, %c0_i32_0 : i32, i32
  }
  func.func @transform_1(%arg0: i32) -> (i32, i32) {
    %c0_i32 = arith.constant 0 : i32
    %c0_i32_0 = arith.constant 0 : i32
    %c0_i32_1 = arith.constant 0 : i32
    return %c0_i32, %c0_i32_0 : i32, i32
  }
  func.func @transform_2(%arg0: i32) -> (i32, i32) {
    %c0_i32 = arith.constant 0 : i32
    %c0_i32_0 = arith.constant 0 : i32
    return %arg0, %c0_i32 : i32, i32
  }
  func.func @transform_3(%arg0: i32) -> (i32, i32) {
    %c0_i32 = arith.constant 0 : i32
    %c0_i32_0 = arith.constant 0 : i32
    %c0_i32_1 = arith.constant 0 : i32
    return %c0_i32, %c0_i32_0 : i32, i32
  }
  func.func @transform_4(%arg0: i32) -> (i32, i32, i32) {
    %c0_i32 = arith.constant 0 : i32
    %c0_i32_0 = arith.constant 0 : i32
    %c0_i32_1 = arith.constant 0 : i32
    return %arg0, %c0_i32, %c0_i32_0 : i32, i32, i32
  }
  func.func @transform_5(%arg0: i32) -> (i32, i32, i32) {
    %c0_i32 = arith.constant 0 : i32
    %c0_i32_0 = arith.constant 0 : i32
    %c0_i32_1 = arith.constant 0 : i32
    return %arg0, %c0_i32, %c0_i32_0 : i32, i32, i32
  }
  func.func @transform_6(%arg0: i32) -> (i32, i32) {
    %c0_i32 = arith.constant 0 : i32
    %c0_i32_0 = arith.constant 0 : i32
    return %arg0, %c0_i32 : i32, i32
  }
}

</mosaic_0001>

<bundles_post_ra>
// kernel: _hecf_impl.1
= control target key start
LH: loop header
LB: loop body
LE: loop exit
PB: predicated region body
PF: predicated region fallthrough
CT: control target
= control target key end

     0   :  { %12 = vsyncpa [#allocation3], 0  ;;  %s1479_s0 = inlined_call_operand.vmem [shape: f32[16,128], index: 0, kind: input, shape index: {}]   ;;  %s1480_s1 = inlined_call_operand.vmem [shape: f32[1,16], index: 1, kind: input, shape index: {}]   ;;  %s1481_s2 = inlined_call_operand.vmem [shape: f32[16,16], index: 2, kind: input, shape index: {}]   ;;  %s1482_s3 = inlined_call_operand.vmem [shape: f32[4,16], index: 3, kind: input, shape index: {}]   ;;  %s1483_s4 = inlined_call_operand.vmem [shape: f32[16,16,128], index: 4, kind: input, shape index: {}]   ;;  %s1484_s5 = inlined_call_operand.hbm [shape: f32[16,16,128], index: 5, kind: output, shape index: {0}]   ;;  %s1485_s6 = inlined_call_operand.vmem [shape: f32[16,16], index: 6, kind: output, shape index: {1}]  }
   0x1   :  { %14 = vsyncpa [#allocation3 + $0x1], 0  ;;  %s1078_s21 = smov 0   ;;  %s1080_s22 = smov 0  }
   0x2   :  { %s1082_s23 = smov 0   ;;  %s1084_s24 = smov 0  }
   0x3 LB: > { %s1099_s25 = sadd.s32 4294967295, %s1038_s24   ;;  %s881_s26 = sadd.s32 4294967294, %s1038_s24   ;;  %s1038_s24 = sphi %s1084_s24, %s1491_s24   ;;  %s1034_s23 = sphi %s1082_s23, %s1490_s23   ;;  %s1030_s22 = sphi %s1080_s22, %s1489_s22   ;;  %s1026_s21 = sphi %s1078_s21, %s1488_s21  }
   0x4   : > { %s1103_s27 = sadd.s32 1, %s1038_s24   ;;  %s142_s28 = sadd.s32 1, %s1034_s23 }
   0x5   : > { %s139_s29 = ssub.s32 %s1038_s24, %s1103_s27  ;;  %p152_p0 = scmp.ne.s32.totalorder %s1034_s23, %s1030_s22 }
   0x6   : > { %p140_p1 = scmp.eq.s32.totalorder %s139_s29, 0  ;;  %p153_p2 = scmp.eq.s32.totalorder %s1099_s25, 1 }
   0x7   : > { %p158_p3 = scmp.ne.s32.totalorder %s1030_s22, %s1026_s21  ;;  %p159_p4 = scmp.eq.s32.totalorder %s881_s26, 1 }
   0x8   : > { %s1114_s30 = scalar_select %p140_p1, %s1034_s23, %s142_s28  }
   0x9   : > { %p1116_p5 = por %p153_p2, %p152_p0  ;;  %p1120_p6 = por %p159_p4, %p158_p3 }
   0xa   : > { %p884_p7 = scmp.ge.s32.totalorder %s1038_s24, 1  ;;  %p229_p8 = scmp.lt.s32.totalorder %s1038_s24, 3 }
   0xc   : > { %p230_p9 = pnand %p884_p7, %p229_p8 }
   0xd   : > { %p268_p10 = scmp.lt.s32.totalorder (!%p230_p9), %s1099_s25, 1  ;;  %v288_v0 = vld [vmem:[%s1482_s3] sm:$0xf] (!%p230_p9)  ;;  %v313_v1 = vlaneseq (!%p230_p9)  ;;  %s887_s18 = sshll.u32 (!%p230_p9), %s1099_s25, 3  ;;  %v1176_v49 = vld [vmem:[%s1479_s0 + $0x8] sm:$0xff] (!%p230_p9) }
   0xe   : > { %233 = sbr.rel (%p230_p9) target bundleno = 368 (0x170), region = 40  ;;  %v312_v2 = vmul.f32 (!%p230_p9), 2.0, %v288_v0  ;;  %v891_v4 = vld [vmem:[%s1480_s1] ss:$0 sm:$0xff] (!%p230_p9)  ;;  %p273_p11 = scmp.lt.s32.totalorder (!%p230_p9), %s887_s18, 15 }
   0xf   : > { %v1134_v3 = vshrl.u32 (!%p230_p9), %v313_v1, 7  ;;  %s259_s29 = sand.u32 (!%p230_p9), 1, %s1030_s22   ;;  %v1165_v40 = vld [vmem:[%s1479_s0] sm:$0xff] (!%p230_p9) }
  0x10   : > { %s885_s13 = sshll.u32 (!%p230_p9), %s259_s29, 7 }
  0x11   : > { %v315_v5 = vsub.s32 (!%p230_p9), 2, %v1134_v3  ;;  %v320_v6 = vsub.s32 (!%p230_p9), 1, %v1134_v3  ;;  %v330_v15 = vsub.s32 (!%p230_p9), 3, %v1134_v3  ;;  %v335_v19 = vsub.s32 (!%p230_p9), 0, %v1134_v3  ;;  %s1180_s16 = scalar_lea.vmem (!%p230_p9), [#allocation2], %s885_s13 }
  0x12   : > { %v386_v30 = vsub.s32 (!%p230_p9), 4, %v1134_v3  ;;  %v397_v32 = vsub.s32 (!%p230_p9), 5, %v1134_v3  ;;  %v408_v34 = vsub.s32 (!%p230_p9), 6, %v1134_v3  ;;  %v419_v36 = vsub.s32 (!%p230_p9), 7, %v1134_v3 }
  0x13   : > { %v316_v8 = vrot.slane (!%p230_p9), %v312_v2, %v315_v5  ;;  %v321_v10 = vrot.slane (!%p230_p9), %v288_v0, %v320_v6  ;;  %v331_v18 = vrot.slane (!%p230_p9), %v288_v0, %v330_v15  ;;  %v336_v21 = vrot.slane (!%p230_p9), %v288_v0, %v335_v19 }
  0x15   : > { %s1131_s11 = scalar_select %p268_p10, %s1099_s25, 1 }
  0x16   : > { %s1493_s18 = smov (!%p273_p11, %s887_s18), 15 }
  0x17   : > { %s886_s12 = sshll.u32 %s1131_s11, 3  ;;  %s898_s19 = sshll.u32 %s1493_s18, 4 }
  0x18   : > { %s271_s17 = scalar_lea.vmem %s1481_s2, %s886_s12  ;;  %s1157_s28 = scalar_lea.vmem %s1483_s4, %s898_s19 }
  0x19   : > { %v287_v7 = vld [vmem:[%s271_s17] sm:$0xff]  ;;  %v291_v39 = vld [vmem:[%s1157_s28 + $0x10] sm:$0xff]  ;;  %v290_v45 = vld [vmem:[%s1157_s28 + $0x8] sm:$0xff]  ;;  %s900_s17 = sshll.u32 %s1099_s25, 11  ;;  %s780_s18 = sshll.u32 %s1180_s16, 4  ;;  %s1229_s18 = int_to_ptr.vmem [resolvable:$true] %s780_s18 }
  0x1a   : > { %v311_v9 = vadd.f32 %v891_v4, %v287_v7  ;;  %v289_v38 = vld [vmem:[%s1157_s28] sm:$0xff]  ;;  %v446_v42 = vmul.f32 0.1, %v291_v39  ;;  %v292_v46 = vld [vmem:[%s1157_s28 + $0x18] sm:$0xff]  ;;  %v445_v52 = vmul.f32 0.1, %v290_v45  ;;  %s1227_s26 = scalar_lea.hbm %s1484_s5, %s900_s17 }
  0x1b   : > { %v444_v41 = vmul.f32 0.1, %v289_v38  ;;  %v447_v53 = vmul.f32 0.1, %v292_v46  ;;  %v293_v54 = vld [vmem:[%s1157_s28 + $0x20] sm:$0xff]  ;;  %v294_v57 = vld [vmem:[%s1157_s28 + $0x28] sm:$0xff] }
  0x1c   : > { %v317_v11 = vmul.f32 %v316_v8, %v311_v9  ;;  %v323_v12 = vmul.f32 %v311_v9, %v311_v9  ;;  %v332_v20 = vmul.f32 %v331_v18, %v311_v9  ;;  %v448_v61 = vmul.f32 0.1, %v293_v54  ;;  %v295_v4 = vld [vmem:[%s1157_s28 + $0x30] sm:$0xff]  ;;  %v296_v7 = vld [vmem:[%s1157_s28 + $0x38] sm:$0xff]  ;;  %s976_s9 = scalar_lea.vmem %s1229_s18, 2048  ;;  %s1040_s25 = smov [#allocation2]  }
  0x1d   : > { %v449_v2 = vmul.f32 0.1, %v294_v57  ;;  %v303_v54 = vld [vmem:[%s1157_s28 + $0x70] sm:$0xff]  ;;  %v304_v57 = vld [vmem:[%s1157_s28 + $0x78] sm:$0xff]  ;;  %p977_p12 = scmp.ne.s32.totalorder %s1229_s18, %s976_s9  ;;  %s980_s10 = sshll.u32 %s1040_s25, 4  ;;  %s981_s10 = int_to_ptr.vmem [resolvable:$false] %s980_s10 }
  0x1e   : > { %v322_v13 = vadd.f32 %v321_v10, %v317_v11  ;;  %v324_v14 = vmul.f32 128.0, %v323_v12  ;;  %v337_v22 = vadd.f32 %v336_v21, %v332_v20  ;;  %v450_v11 = vmul.f32 0.1, %v295_v4  ;;  %s982_s13 = scalar_lea.vmem %s981_s10, 4096  ;;  %p983_p1 = scmp.lt.s32.totalorder %s1229_s18, %s981_s10 }
  0x1f   : > { %p978_p13 = pnand %p977_p12, %p1116_p5  ;;  %p984_p2 = scmp.lt.s32.totalorder %s982_s13, %s976_s9 }
  0x20   : > { %v325_v16 = vadd.f32 %v324_v14, %v322_v13 }
  0x21   : > { %p979_p0 = pneg %p978_p13  ;;  %p985_p3 = por %p984_p2, %p983_p1 }
  0x22   : > { %v326_v17 = vmax.f32 %v325_v16, 1e-16  ;;  %v297_v16 = vld [vmem:[%s1157_s28 + $0x40] sm:$0xff] }
  0x23   : > { %p986_p4 = pnand %p985_p3, %p979_p0 }
  0x24   : > { %942 = vrsqrt.f32 %v326_v17 }
  0x2e   : > { %v943_v23 = vpop.eup %942 }
  0x2f   : > { %v338_v24 = vmul.f32 %v943_v23, %v337_v22  ;;  %v452_v23 = vmul.f32 0.1, %v297_v16 }
  0x31   : > { %v339_v25 = vadd.f32 %v338_v24, %v311_v9 }
  0x33   : > { %v343_v26 = vrot.slane %v339_v25, %v335_v19  ;;  %v354_v27 = vrot.slane %v339_v25, %v320_v6  ;;  %v365_v28 = vrot.slane %v339_v25, %v315_v5  ;;  %v376_v29 = vrot.slane %v339_v25, %v330_v15  ;;  %v298_v19 = vld [vmem:[%s1157_s28 + $0x48] sm:$0xff] }
  0x34   : > { %v387_v31 = vrot.slane %v339_v25, %v386_v30  ;;  %v398_v33 = vrot.slane %v339_v25, %v397_v32  ;;  %v409_v35 = vrot.slane %v339_v25, %v408_v34  ;;  %v420_v37 = vrot.slane %v339_v25, %v419_v36 }
  0x35   : > { %345 = vbcast.lane.b32.xlu0 %v343_v26, 256  ;;  %356 = vbcast.lane.b32.xlu1 %v354_v27, 256  ;;  %v451_v15 = vmul.f32 0.1, %v296_v7 }
  0x39   : > { %349 = vbcast.lane.b32.xlu0 %v343_v26, 264  ;;  %360 = vbcast.lane.b32.xlu1 %v354_v27, 264  ;;  %v453_v27 = vmul.f32 0.1, %v298_v19 }
  0x3d   : > { %367 = vbcast.lane.b32.xlu0 %v365_v28, 256  ;;  %371 = vbcast.lane.b32.xlu1 %v365_v28, 264  ;;  %v299_v28 = vld [vmem:[%s1157_s28 + $0x50] sm:$0xff] }
  0x41   : > { %378 = vbcast.lane.b32.xlu0 %v376_v29, 256  ;;  %382 = vbcast.lane.b32.xlu1 %v376_v29, 264 }
  0x45   : > { %389 = vbcast.lane.b32.xlu0 %v387_v31, 256  ;;  %393 = vbcast.lane.b32.xlu1 %v387_v31, 264  ;;  %v300_v31 = vld [vmem:[%s1157_s28 + $0x58] sm:$0xff] }
  0x46   : > { %v455_v39 = vmul.f32 0.1, %v300_v31 }
  0x49   : > { %400 = vbcast.lane.b32.xlu0 %v398_v33, 256  ;;  %404 = vbcast.lane.b32.xlu1 %v398_v33, 264 }
  0x4d   : > { %411 = vbcast.lane.b32.xlu0 %v409_v35, 256  ;;  %415 = vbcast.lane.b32.xlu1 %v409_v35, 264  ;;  %v454_v35 = vmul.f32 0.1, %v299_v28 }
  0x51   : > { %422 = vbcast.lane.b32.xlu0 %v420_v37, 256  ;;  %426 = vbcast.lane.b32.xlu1 %v420_v37, 264 }
  0xa7   : > { %v346_v43 = vpop.permute.xlu0 %345  ;;  %v357_v44 = vpop.permute.xlu1 %356 }
  0xa8   : > { %v428_v47 = vadd.f32 %v346_v43, %v1165_v40  ;;  %v430_v48 = vadd.f32 %v357_v44, %v1165_v40  ;;  %v302_v44 = vld [vmem:[%s1157_s28 + $0x68] sm:$0xff] }
  0xaa   : > { %v460_v50 = vadd.f32 %v444_v41, %v428_v47  ;;  %v462_v51 = vadd.f32 %v446_v42, %v430_v48  ;;  %v301_v41 = vld [vmem:[%s1157_s28 + $0x60] sm:$0xff]  ;;  %s1233_s28 = scalar_lea.sflag [#allocation3], %s259_s29 }
  0xab   : > { %v350_v55 = vpop.permute.xlu0 %349  ;;  %v361_v56 = vpop.permute.xlu1 %360  ;;  %v456_v48 = vmul.f32 0.1, %v301_v41 }
  0xac   : > { %476 = vst [vmem:[%s1180_s16] sm:$0xff] %v460_v50  ;;  %478 = vst [vmem:[%s1180_s16 + $0x10] sm:$0xff] %v462_v51  ;;  %v429_v58 = vadd.f32 %v350_v55, %v1176_v49  ;;  %v492_v59 = vmul.f32 %v460_v50, %v460_v50  ;;  %v431_v60 = vadd.f32 %v361_v56, %v1176_v49 }
  0xad   : > { %v494_v0 = vmul.f32 %v462_v51, %v462_v51 }
  0xae   : > { %v461_v62 = vadd.f32 %v445_v52, %v429_v58  ;;  %508 = vadd.xlane.f32.xlu0 %v492_v59  ;;  %v463_v63 = vadd.f32 %v447_v53, %v431_v60  ;;  %v457_v53 = vmul.f32 0.1, %v302_v44 }
  0xaf   : > { %v368_v5 = vpop.permute.xlu0 %367  ;;  %v372_v6 = vpop.permute.xlu1 %371 }
  0xb0   : > { %477 = vst [vmem:[%s1180_s16 + $0x8] sm:$0xff] %v461_v62  ;;  %479 = vst [vmem:[%s1180_s16 + $0x18] sm:$0xff] %v463_v63  ;;  %v432_v8 = vadd.f32 %v368_v5, %v1165_v40  ;;  %v493_v9 = vmul.f32 %v461_v62, %v461_v62  ;;  %v433_v10 = vadd.f32 %v372_v6, %v1176_v49 }
  0xb1   : > { %v495_v14 = vmul.f32 %v463_v63, %v463_v63 }
  0xb2   : > { %v464_v12 = vadd.f32 %v448_v61, %v432_v8  ;;  %512 = vadd.xlane.f32.xlu0 %v494_v0  ;;  %510 = vadd.xlane.f32.xlu1 %v493_v9  ;;  %v465_v13 = vadd.f32 %v449_v2, %v433_v10  ;;  %v458_v61 = vmul.f32 0.1, %v303_v54  ;;  %v459_v2 = vmul.f32 0.1, %v304_v57 }
  0xb3   : > { %v379_v17 = vpop.permute.xlu0 %378  ;;  %v383_v18 = vpop.permute.xlu1 %382 }
  0xb4   : > { %480 = vst [vmem:[%s1180_s16 + $0x20] sm:$0xff] %v464_v12  ;;  %481 = vst [vmem:[%s1180_s16 + $0x28] sm:$0xff] %v465_v13  ;;  %v434_v20 = vadd.f32 %v379_v17, %v1165_v40  ;;  %v496_v21 = vmul.f32 %v464_v12, %v464_v12  ;;  %v435_v22 = vadd.f32 %v383_v18, %v1176_v49 }
  0xb5   : > { %v497_v26 = vmul.f32 %v465_v13, %v465_v13 }
  0xb6   : > { %v466_v24 = vadd.f32 %v450_v11, %v434_v20  ;;  %514 = vadd.xlane.f32.xlu0 %v495_v14  ;;  %516 = vadd.xlane.f32.xlu1 %v496_v21  ;;  %v467_v25 = vadd.f32 %v451_v15, %v435_v22 }
  0xb7   : > { %v390_v29 = vpop.permute.xlu0 %389  ;;  %v394_v30 = vpop.permute.xlu1 %393 }
  0xb8   : > { %482 = vst [vmem:[%s1180_s16 + $0x30] sm:$0xff] %v466_v24  ;;  %483 = vst [vmem:[%s1180_s16 + $0x38] sm:$0xff] %v467_v25  ;;  %v436_v32 = vadd.f32 %v390_v29, %v1165_v40  ;;  %v498_v33 = vmul.f32 %v466_v24, %v466_v24  ;;  %v437_v34 = vadd.f32 %v394_v30, %v1176_v49 }
  0xb9   : > { %v499_v38 = vmul.f32 %v467_v25, %v467_v25 }
  0xba   : > { %v468_v36 = vadd.f32 %v452_v23, %v436_v32  ;;  %518 = vadd.xlane.f32.xlu0 %v497_v26  ;;  %520 = vadd.xlane.f32.xlu1 %v498_v33  ;;  %v469_v37 = vadd.f32 %v453_v27, %v437_v34 }
  0xbb   : > { %v401_v42 = vpop.permute.xlu0 %400  ;;  %v405_v43 = vpop.permute.xlu1 %404 }
  0xbc   : > { %484 = vst [vmem:[%s1180_s16 + $0x40] sm:$0xff] %v468_v36  ;;  %485 = vst [vmem:[%s1180_s16 + $0x48] sm:$0xff] %v469_v37  ;;  %v438_v45 = vadd.f32 %v401_v42, %v1165_v40  ;;  %v500_v46 = vmul.f32 %v468_v36, %v468_v36  ;;  %v439_v47 = vadd.f32 %v405_v43, %v1176_v49 }
  0xbd   : > { %v501_v52 = vmul.f32 %v469_v37, %v469_v37 }
  0xbe   : > { %v470_v50 = vadd.f32 %v454_v35, %v438_v45  ;;  %522 = vadd.xlane.f32.xlu0 %v499_v38  ;;  %524 = vadd.xlane.f32.xlu1 %v500_v46  ;;  %v471_v51 = vadd.f32 %v455_v39, %v439_v47 }
  0xbf   : > { %v412_v55 = vpop.permute.xlu0 %411  ;;  %v416_v56 = vpop.permute.xlu1 %415 }
  0xc0   : > { %486 = vst [vmem:[%s1180_s16 + $0x50] sm:$0xff] %v470_v50  ;;  %487 = vst [vmem:[%s1180_s16 + $0x58] sm:$0xff] %v471_v51  ;;  %v440_v58 = vadd.f32 %v412_v55, %v1165_v40  ;;  %v502_v59 = vmul.f32 %v470_v50, %v470_v50  ;;  %v441_v60 = vadd.f32 %v416_v56, %v1176_v49 }
  0xc1   : > { %v503_v0 = vmul.f32 %v471_v51, %v471_v51 }
  0xc2   : > { %v472_v62 = vadd.f32 %v456_v48, %v440_v58  ;;  %526 = vadd.xlane.f32.xlu0 %v501_v52  ;;  %528 = vadd.xlane.f32.xlu1 %v502_v59  ;;  %v473_v63 = vadd.f32 %v457_v53, %v441_v60 }
  0xc3   : > { %v423_v4 = vpop.permute.xlu0 %422  ;;  %v427_v5 = vpop.permute.xlu1 %426 }
  0xc4   : > { %488 = vst [vmem:[%s1180_s16 + $0x60] sm:$0xff] %v472_v62  ;;  %489 = vst [vmem:[%s1180_s16 + $0x68] sm:$0xff] %v473_v63  ;;  %v442_v6 = vadd.f32 %v423_v4, %v1165_v40  ;;  %v504_v7 = vmul.f32 %v472_v62, %v472_v62  ;;  %v443_v8 = vadd.f32 %v427_v5, %v1176_v49 }
  0xc5   : > { %v505_v11 = vmul.f32 %v473_v63, %v473_v63 }
  0xc6   : > { %v474_v9 = vadd.f32 %v458_v61, %v442_v6  ;;  %530 = vadd.xlane.f32.xlu0 %v503_v0  ;;  %532 = vadd.xlane.f32.xlu1 %v504_v7  ;;  %v475_v10 = vadd.f32 %v459_v2, %v443_v8 }
  0xc8   : > { %490 = vst [vmem:[%s1180_s16 + $0x70] sm:$0xff] %v474_v9  ;;  %491 = vst [vmem:[%s1180_s16 + $0x78] sm:$0xff] %v475_v10  ;;  %v506_v12 = vmul.f32 %v474_v9, %v474_v9  ;;  %v507_v13 = vmul.f32 %v475_v10, %v475_v10 }
  0xca   : > { %534 = vadd.xlane.f32.xlu0 %v505_v11  ;;  %536 = vadd.xlane.f32.xlu1 %v506_v12 }
  0xce   : > { %538 = vadd.xlane.f32.xlu0 %v507_v13 }
  0xcf   : > { %989 = shalt.err (!%p986_p4)
}
  0xd0   : > { %s990_s29 = scalar_lea.hbm %s1227_s26, 2048  ;;  %s994_s16 = scalar_lea.hbm %s1484_s5, 4096 }
  0xd1   : > { %p991_p7 = scmp.ne.s32.totalorder %s1227_s26, %s990_s29  ;;  %p995_p10 = scmp.lt.u32.totalorder %s1227_s26, %s1484_s5 }
  0xd2   : > { %p996_p11 = scmp.lt.u32.totalorder %s994_s16, %s990_s29  ;;  %p998_p13 = scmp.lt.u32.totalorder %s990_s29, %s1227_s26 }
  0xd3   : > { %p992_p8 = pnand %p991_p7, %p1116_p5 }
  0xd4   : > { %p997_p12 = por %p996_p11, %p995_p10 }
  0xd5   : > { %p993_p9 = pneg %p992_p8 }
  0xd6   : > { %p999_p0 = por %p998_p13, %p997_p12 }
  0xd8   : > { %p1000_p1 = pnand %p999_p0, %p993_p9 }
  0xda   : > { %1003 = shalt.err (!%p1000_p1)
}
  0xdb   : > { %s1041_s20 = smov 128   ;;  %s1042_s9 = smov 8   ;;  %v669_v17 = vand.u32 127, %v313_v1  ;;  %vm679_vm7 = vcmask 130112   ;;  %vm744_vm12 = vcmask 1041409  }
  0xdc   : > { %901 = dma.vmem_to_hbm [thread:$0]  (%p1116_p5), %s1229_s18, 2048, %s1227_s26, %s1233_s28, %s1041_s20, %s1041_s20, %s1042_s9  }
  0xdd   : > { %v674_v20 = vadd.s32 4294967288, %v669_v17  ;;  %v1281_v25 = vsub.s32 %v669_v17, %v1134_v3  ;;  %s283_s26 = scalar_lea.vmem %s1485_s6, %s886_s12 }
  0xdf   : > { %v1284_v1 = vsub.s32 %v674_v20, %v1134_v3 }
 0x13b   : > { %v509_v40 = vpop.xlane.xlu0 %508 }
 0x13c   : > { %944 = vrsqrt.f32 %v509_v40  ;;  %vm542_vm0 = vcmp.eq.f32.partialorder %v509_v40, inf  ;;  %vm544_vm1 = vcmp.eq.f32.partialorder %v509_v40, 0.0  ;;  %v545_v28 = vand.u32 2147483648, %v509_v40 }
 0x13f   : > { %v1257_v49 = vpop.xlane.xlu1 %510  ;;  %v1259_v14 = vpop.xlane.xlu0 %512 }
 0x140   : > { %946 = vrsqrt.f32 %v1257_v49  ;;  %vm549_vm2 = vcmp.eq.f32.partialorder %v1257_v49, inf  ;;  %vm551_vm3 = vcmp.eq.f32.partialorder %v1257_v49, 0.0  ;;  %v552_v31 = vand.u32 2147483648, %v1257_v49 }
 0x141   : > { %948 = vrsqrt.f32 %v1259_v14  ;;  %vm556_vm4 = vcmp.eq.f32.partialorder %v1259_v14, inf  ;;  %vm558_vm5 = vcmp.eq.f32.partialorder %v1259_v14, 0.0  ;;  %v559_v35 = vand.u32 2147483648, %v1259_v14 }
 0x143   : > { %v1263_v15 = vpop.xlane.xlu1 %516  ;;  %v1265_v16 = vpop.xlane.xlu0 %514 }
 0x144   : > { %950 = vrsqrt.f32 %v1265_v16  ;;  %vm570_vm6 = vcmp.eq.f32.partialorder %v1263_v15, inf  ;;  %vm572_vm8 = vcmp.eq.f32.partialorder %v1263_v15, 0.0  ;;  %v573_v38 = vand.u32 2147483648, %v1263_v15 }
 0x145   : > { %952 = vrsqrt.f32 %v1263_v15  ;;  %vm563_vm9 = vcmp.eq.f32.partialorder %v1265_v16, inf  ;;  %vm565_vm10 = vcmp.eq.f32.partialorder %v1265_v16, 0.0  ;;  %v566_v44 = vand.u32 2147483648, %v1265_v16 }
 0x146   : > { %v945_v21 = vpop.eup %944 }
 0x147   : > { %v1270_v18 = vpop.xlane.xlu1 %520  ;;  %v1272_v19 = vpop.xlane.xlu0 %518  ;;  %v541_v27 = vmul.f32 %v945_v21, %v509_v40 }
 0x148   : > { %954 = vrsqrt.f32 %v1272_v19  ;;  %vm584_vm11 = vcmp.eq.f32.partialorder %v1270_v18, inf  ;;  %vm586_vm13 = vcmp.eq.f32.partialorder %v1270_v18, 0.0  ;;  %v587_v53 = vand.u32 2147483648, %v1270_v18 }
 0x149   : > { %956 = vrsqrt.f32 %v1270_v18  ;;  %v543_v37 = vsel %vm542_vm0, %v509_v40, %v541_v27  ;;  %vm577_vm14 = vcmp.eq.f32.partialorder %v1272_v19, inf  ;;  %vm579_vm15 = vcmp.eq.f32.partialorder %v1272_v19, 0.0 }
 0x14a   : > { %v947_v22 = vpop.eup %946  ;;  %v546_v48 = vsel %vm544_vm1, %v545_v28, %v543_v37  ;;  %v580_v55 = vand.u32 2147483648, %v1272_v19 }
 0x14b   : > { %v1276_v23 = vpop.xlane.xlu1 %524  ;;  %v1278_v24 = vpop.xlane.xlu0 %522  ;;  %v548_v29 = vmul.f32 %v947_v22, %v1257_v49  ;;  %v673_v57 = vrot.slane %v546_v48, %v1281_v25 }
 0x14c   : > { %v949_v26 = vpop.eup %948  ;;  %958 = vrsqrt.f32 %v1278_v24  ;;  %vm598_vm0 = vcmp.eq.f32.partialorder %v1276_v23, inf  ;;  %v601_v4 = vand.u32 2147483648, %v1276_v23  ;;  %vm600_vm1 = vcmp.eq.f32.partialorder %v1276_v23, 0.0 }
 0x14d   : > { %960 = vrsqrt.f32 %v1276_v23  ;;  %v555_v34 = vmul.f32 %v949_v26, %v1259_v14  ;;  %v550_v39 = vsel %vm549_vm2, %v1257_v49, %v548_v29  ;;  %vm591_vm2 = vcmp.eq.f32.partialorder %v1278_v24, inf }
 0x14e   : > { %v951_v30 = vpop.eup %950  ;;  %v553_v52 = vsel %vm551_vm3, %v552_v31, %v550_v39  ;;  %vm593_vm3 = vcmp.eq.f32.partialorder %v1278_v24, 0.0  ;;  %v594_v9 = vand.u32 2147483648, %v1278_v24 }
 0x14f   : > { %v1294_v3 = vpop.xlane.xlu1 %528  ;;  %v1296_v32 = vpop.xlane.xlu0 %526  ;;  %v562_v36 = vmul.f32 %v951_v30, %v1265_v16  ;;  %v557_v50 = vsel %vm556_vm4, %v1259_v14, %v555_v34  ;;  %v678_v0 = vrot.slane %v553_v52, %v1284_v1  ;;  %vm746_vm4 = vcmask 1042434  }
 0x150   : > { %v953_v33 = vpop.eup %952  ;;  %962 = vrsqrt.f32 %v1294_v3  ;;  %v560_v58 = vsel %vm558_vm5, %v559_v35, %v557_v50  ;;  %vm612_vm5 = vcmp.eq.f32.partialorder %v1294_v3, inf  ;;  %v608_v29 = vand.u32 2147483648, %v1296_v32 }
 0x151   : > { %964 = vrsqrt.f32 %v1296_v32  ;;  %v569_v42 = vmul.f32 %v953_v33, %v1263_v15  ;;  %v564_v43 = vsel %vm563_vm9, %v1265_v16, %v562_v36  ;;  %v684_v6 = vrot.slane %v560_v58, %v1281_v25 }
 0x152   : > { %v955_v41 = vpop.eup %954  ;;  %v567_v54 = vsel %vm565_vm10, %v566_v44, %v564_v43  ;;  %v680_v14 = vsel %vm679_vm7, %v678_v0, %v673_v57  ;;  %vm607_vm9 = vcmp.eq.f32.partialorder %v1296_v32, 0.0 }
 0x153   : > { %v1316_v45 = vpop.xlane.xlu1 %532  ;;  %v1318_v46 = vpop.xlane.xlu0 %530  ;;  %v576_v51 = vmul.f32 %v955_v41, %v1272_v19  ;;  %v571_v59 = vsel %vm570_vm6, %v1263_v15, %v569_v42  ;;  %v688_v5 = vrot.slane %v567_v54, %v1284_v1  ;;  %v615_v15 = vand.u32 2147483648, %v1294_v3 }
 0x154   : > { %v957_v47 = vpop.eup %956  ;;  %966 = vrsqrt.f32 %v1316_v45  ;;  %v574_v7 = vsel %vm572_vm8, %v573_v38, %v571_v59  ;;  %vm605_vm6 = vcmp.eq.f32.partialorder %v1296_v32, inf  ;;  %vm614_vm8 = vcmp.eq.f32.partialorder %v1294_v3, 0.0 }
 0x155   : > { %968 = vrsqrt.f32 %v1318_v46  ;;  %v583_v60 = vmul.f32 %v957_v47, %v1270_v18  ;;  %v578_v2 = vsel %vm577_vm14, %v1272_v19, %v576_v51  ;;  %v693_v16 = vrot.slane %v574_v7, %v1281_v25 }
 0x156   : > { %v959_v56 = vpop.eup %958  ;;  %v581_v12 = vsel %vm579_vm15, %v580_v55, %v578_v2  ;;  %v689_v17 = vsel %vm679_vm7, %v688_v5, %v684_v6  ;;  %vm626_vm10 = vcmp.eq.f32.partialorder %v1316_v45, inf  ;;  %v629_v33 = vand.u32 2147483648, %v1316_v45 }
 0x157   : > { %v1343_v61 = vpop.xlane.xlu1 %536  ;;  %v1345_v62 = vpop.xlane.xlu0 %534  ;;  %v590_v8 = vmul.f32 %v959_v56, %v1278_v24  ;;  %v585_v11 = vsel %vm584_vm11, %v1270_v18, %v583_v60  ;;  %v697_v22 = vrot.slane %v581_v12, %v1284_v1  ;;  %v745_v30 = vsel %vm744_vm12, %v689_v17, %v680_v14 }
 0x158   : > { %v961_v63 = vpop.eup %960  ;;  %970 = vrsqrt.f32 %v1343_v61  ;;  %v588_v21 = vsel %vm586_vm13, %v587_v53, %v585_v11  ;;  %vm628_vm11 = vcmp.eq.f32.partialorder %v1316_v45, 0.0  ;;  %vm748_vm13 = vcmask 1043459  }
 0x159   : > { %v597_v13 = vmul.f32 %v961_v63, %v1276_v23  ;;  %972 = vrsqrt.f32 %v1345_v62  ;;  %v592_v26 = vsel %vm591_vm2, %v1278_v24, %v590_v8  ;;  %v702_v34 = vrot.slane %v588_v21, %v1281_v25 }
 0x15a   : > { %v963_v10 = vpop.eup %962  ;;  %v595_v35 = vsel %vm593_vm3, %v594_v9, %v592_v26  ;;  %v698_v38 = vsel %vm679_vm7, %v697_v22, %v693_v16  ;;  %vm750_vm12 = vcmask 1044484   ;;  %vm619_vm14 = vcmp.eq.f32.partialorder %v1318_v46, inf }
 0x15b   : > { %v1368_v40 = vpop.xlane.xlu0 %538  ;;  %v965_v49 = vpop.eup %964  ;;  %v599_v27 = vsel %vm598_vm0, %v1276_v23, %v597_v13  ;;  %v611_v28 = vmul.f32 %v963_v10, %v1294_v3  ;;  %v622_v41 = vand.u32 2147483648, %v1318_v46  ;;  %vm752_vm15 = vcmask 1045509  }
 0x15c   : > { %v604_v19 = vmul.f32 %v965_v49, %v1296_v32  ;;  %974 = vrsqrt.f32 %v1368_v40  ;;  %v602_v39 = vsel %vm600_vm1, %v601_v4, %v599_v27  ;;  %vm621_vm0 = vcmp.eq.f32.partialorder %v1318_v46, 0.0 }
 0x15d   : > { %v613_v24 = vsel %vm612_vm5, %v1294_v3, %v611_v28  ;;  %v706_v23 = vrot.slane %v595_v35, %v1284_v1  ;;  %vm640_vm1 = vcmp.eq.f32.partialorder %v1343_v61, inf  ;;  %v747_v50 = vsel %vm746_vm4, %v698_v38, %v745_v30 }
 0x15e   : > { %v967_v20 = vpop.eup %966  ;;  %v606_v31 = vsel %vm605_vm6, %v1296_v32, %v604_v19  ;;  %v711_v51 = vrot.slane %v602_v39, %v1281_v25  ;;  %vm642_vm2 = vcmp.eq.f32.partialorder %v1343_v61, 0.0  ;;  %v643_v54 = vand.u32 2147483648, %v1343_v61 }
 0x15f   : > { %v969_v18 = vpop.eup %968  ;;  %v625_v36 = vmul.f32 %v967_v20, %v1316_v45  ;;  %v609_v43 = vsel %vm607_vm9, %v608_v29, %v606_v31  ;;  %vm633_vm3 = vcmp.eq.f32.partialorder %v1345_v62, inf  ;;  %vm635_vm4 = vcmp.eq.f32.partialorder %v1345_v62, 0.0 }
 0x160   : > { %v618_v37 = vmul.f32 %v969_v18, %v1318_v46  ;;  %v715_v53 = vrot.slane %v609_v43, %v1284_v1  ;;  %v707_v59 = vsel %vm679_vm7, %v706_v23, %v702_v34  ;;  %v636_v60 = vand.u32 2147483648, %v1345_v62 }
 0x161   : > { %v627_v32 = vsel %vm626_vm10, %v1316_v45, %v625_v36  ;;  %vm647_vm5 = vcmp.eq.f32.partialorder %v1368_v40, inf  ;;  %vm649_vm6 = vcmp.eq.f32.partialorder %v1368_v40, 0.0  ;;  %v650_v6 = vand.u32 2147483648, %v1368_v40 }
 0x162   : > { %v971_v42 = vpop.eup %970  ;;  %v620_v44 = vsel %vm619_vm14, %v1318_v46, %v618_v37  ;;  %v616_v46 = vsel %vm614_vm8, %v615_v15, %v613_v24  ;;  %v630_v3 = vsel %vm628_vm11, %v629_v33, %v627_v32  ;;  %v716_v4 = vsel %vm679_vm7, %v715_v53, %v711_v51 }
 0x163   : > { %v623_v47 = vsel %vm621_vm0, %v622_v41, %v620_v44  ;;  %v639_v48 = vmul.f32 %v971_v42, %v1343_v61  ;;  %v973_v52 = vpop.eup %972  ;;  %v720_v63 = vrot.slane %v616_v46, %v1281_v25  ;;  %v729_v7 = vrot.slane %v630_v3, %v1281_v25 }
 0x164   : > { %v724_v55 = vrot.slane %v623_v47, %v1284_v1  ;;  %v632_v57 = vmul.f32 %v973_v52, %v1345_v62  ;;  %v749_v10 = vsel %vm748_vm13, %v707_v59, %v747_v50  ;;  %vm754_vm8 = vcmask 1046534  }
 0x165   : > { %v641_v56 = vsel %vm640_vm1, %v1343_v61, %v639_v48  ;;  %vm756_vm9 = vcmask 1047559   ;;  %v751_v61 = vsel %vm750_vm12, %v716_v4, %v749_v10  ;;  %vm759_vm10 = vcmask 130048  }
 0x166   : > { %v975_v58 = vpop.eup %974  ;;  %v634_v0 = vsel %vm633_vm3, %v1345_v62, %v632_v57  ;;  %v644_v5 = vsel %vm642_vm2, %v643_v54, %v641_v56  ;;  %v725_v8 = vsel %vm679_vm7, %v724_v55, %v720_v63 }
 0x167   : > { %v646_v2 = vmul.f32 %v975_v58, %v1368_v40  ;;  %v637_v45 = vsel %vm635_vm4, %v636_v60, %v634_v0  ;;  %v738_v12 = vrot.slane %v644_v5, %v1281_v25 }
 0x168   : > { %v733_v9 = vrot.slane %v637_v45, %v1284_v1 }
 0x169   : > { %v648_v62 = vsel %vm647_vm5, %v1368_v40, %v646_v2  ;;  %v753_v40 = vsel %vm752_vm15, %v725_v8, %v751_v61 }
 0x16a   : > { %v651_v11 = vsel %vm649_vm6, %v650_v6, %v648_v62  ;;  %v734_v13 = vsel %vm679_vm7, %v733_v9, %v729_v7 }
 0x16b   : > { %v742_v49 = vrot.slane %v651_v11, %v1284_v1  ;;  %v755_v14 = vsel %vm754_vm8, %v734_v13, %v753_v40 }
 0x16d   : > { %v743_v15 = vsel %vm679_vm7, %v742_v49, %v738_v12 }
 0x16e   : > { %v757_v16 = vsel %vm756_vm9, %v743_v15, %v755_v14 }
 0x16f   : > { %760 = vst.msk [vmem:[%s283_s26] sm:$0xff] %vm759_vm10, %v757_v16 }
 0x170 PF: > { %p907_p5 = scmp.ge.s32.totalorder %s1038_s24, 2  ;;  %s798_s28 = sand.u32 1, %s1026_s21  }
 0x171   : > { %s799_s11 = scalar_lea.sflag [#allocation3], %s798_s28 }
 0x172   : > { %p904_p2 = pnand %p907_p5, %p1120_p6 }
 0x174   : > { %1021 = dma.done.wait (!%p904_p2), %s799_s11, 2048  }
 0x175   : > { %1023 = vsyncadd (!%p904_p2), %s799_s11, 4294965248  ;;  %p17_p3 = scmp.ge.s32.totalorder %s1103_s27, 4   ;;  %s1488_s21 = smov %s1030_s22 }
 0x176   : > { %s1489_s22 = smov %s1034_s23  ;;  %s1490_s23 = smov %s1114_s30 }
 0x177   : > { %s1491_s24 = smov %s1103_s27  ;;  %19 = sbr.rel (!%p17_p3) target bundleno = 3 (0x3), region = 90 }
 0x17e   :  { %811 = vsyncpa [#allocation3], 1 }
 0x17f   :  { %813 = vsyncpa [#allocation3 + $0x1], 1 }

</bundles_post_ra>
